<compile_context>
chip_gen: v5e
topology: v5e:2x2
jax: 0.10.0
libtpu: 0.0.40
codegen_flags: <defaults>
</compile_context>

<pallas_src>
import functools

import jax
import jax.numpy as jnp
from jax import lax
from jax.experimental import pallas as pl
from jax.experimental.pallas import tpu as pltpu


def _round_up(x, m):
    return ((x + m - 1) // m) * m


_GATHER_ROWS = 16  # lin rows fetched per gather grid step (one bf16 sublane tile)


def _vmem_limit_bytes():
    """Generation-dependent VMEM budget (v7x: 64 MiB/TC, v5e/v6e: 128 MiB)."""
    default = 48 * 1024 * 1024
    try:
        cap = int(getattr(pltpu.get_tpu_info(), "vmem_capacity_bytes", 0))
    except Exception:  # non-TPU / interpret fallback
        return default
    if cap <= 0:
        return default
    return max(min(cap - 16 * 1024 * 1024, 100 * 1024 * 1024), 32 * 1024 * 1024)


# ---------------------------------------------------------------------------
# Kernel 1: node-wise linear layer  lin = x @ W^T + b  (MXU, bf16 -> f32 acc)
# ---------------------------------------------------------------------------
def _linear_kernel(x_ref, w_ref, b_ref, lin_ref):
    lin_ref[...] = (
        jnp.dot(x_ref[...], w_ref[...], preferred_element_type=jnp.float32)
        + b_ref[...]
    ).astype(lin_ref.dtype)


# ---------------------------------------------------------------------------
# Kernel 2: data-dependent row gather  gathered[e] = lin[src[e]]
#   src ids live in SMEM (scalar prefetch) and drive the lin BlockSpec
#   index_map; each grid step DMAs _GATHER_ROWS single rows from HBM.
# ---------------------------------------------------------------------------
def _gather_kernel(src_ref, *refs):
    del src_ref                       # consumed by the BlockSpec index maps only
    out_ref = refs[-1]
    rows = [r[0] for r in refs[:-1]]  # each (1, C) bf16
    out_ref[...] = jnp.concatenate(rows, axis=0)


# ---------------------------------------------------------------------------
# Kernel 3: blocked one-hot scatter-mean over destination tiles
# ---------------------------------------------------------------------------
def _scatter_mean_kernel(dst_ref, g_ref, out_ref, acc_ref, cnt_ref, *,
                         dst_tile: int, normalize: bool):
    i = pl.program_id(0)              # destination-row tile
    j = pl.program_id(1)              # edge chunk (reduction axis, innermost)

    @pl.when(j == 0)
    def _():
        acc_ref[...] = jnp.zeros_like(acc_ref)
        cnt_ref[...] = jnp.zeros_like(cnt_ref)

    dst = dst_ref[0]                  # (1, E_TILE) int32, lane-dense
    e_tile = dst.shape[1]

    # One-hot scatter matrix for this dst tile; padded edges (dst == -1) give
    # all-zero columns so they never contribute.
    row_iota = lax.broadcasted_iota(jnp.int32, (dst_tile, e_tile), 0) + i * dst_tile
    hit = dst == row_iota                                    # (DST, E_TILE) bool
    scatter_oh = hit.astype(jnp.bfloat16)

    acc_ref[...] += jnp.dot(scatter_oh, g_ref[...],
                            preferred_element_type=jnp.float32)   # (DST, C)
    cnt_ref[...] += jnp.sum(hit.astype(jnp.float32), axis=1, keepdims=True)

    @pl.when(j == pl.num_programs(1) - 1)
    def _():
        inv = pl.reciprocal(jnp.maximum(cnt_ref[...], 1.0), approx=True)  # EUP
        mean = acc_ref[...] * inv
        if normalize:  # F.normalize(out, p=2.0, dim=-1)
            nsq = jnp.sum(mean * mean, axis=-1, keepdims=True)
            mean = mean * lax.rsqrt(jnp.maximum(nsq, 1e-24))
        out_ref[...] = mean.astype(out_ref.dtype)


def sage_conv(x, edge_index, weight, bias, *, dim_size, normalize=False,
              edge_tile=512):
    """x: (N, C_in); edge_index: (2, E) int; weight: (C_out, C_in); bias: (C_out,)."""
    n, c_in = x.shape
    c_out = weight.shape[0]
    num_edges = edge_index.shape[1]
    vmem_limit = _vmem_limit_bytes()

    # ---- lane-dense padding: feature dims -> multiples of 128 ----
    c_in_pad = _round_up(c_in, 128)
    c_out_pad = _round_up(c_out, 128)

    if n <= 1024:
        node_tile = _round_up(n, 8)
        n_pad = node_tile
    else:
        node_tile = 1024
        n_pad = _round_up(n, node_tile)

    if dim_size <= 512:
        dst_tile = _round_up(dim_size, 8)
        m_pad = dst_tile
    else:
        dst_tile = 512
        m_pad = _round_up(dim_size, dst_tile)

    e_pad = _round_up(max(num_edges, edge_tile), edge_tile)
    num_chunks = e_pad // edge_tile

    x_p = jnp.pad(x.astype(jnp.float32),
                  ((0, n_pad - n), (0, c_in_pad - c_in))).astype(jnp.bfloat16)
    w_t = jnp.pad(weight.T.astype(jnp.float32),
                  ((0, c_in_pad - c_in), (0, c_out_pad - c_out))).astype(jnp.bfloat16)
    b_p = jnp.pad(bias.astype(jnp.float32),
                  (0, c_out_pad - c_out)).reshape(1, c_out_pad)

    src = edge_index[0].astype(jnp.int32)
    dst = edge_index[1].astype(jnp.int32)
    src_p = jnp.pad(src, (0, e_pad - num_edges), constant_values=0)    # gathers row 0
    dst_p = jnp.pad(dst, (0, e_pad - num_edges), constant_values=-1)   # zero column
    dst3 = dst_p.reshape(num_chunks, 1, edge_tile)                     # lane-dense

    # ---- kernel 1: lin = x @ W^T + b  (bf16 output) ----
    def _run_linear(single_buffer):
        if single_buffer:
            # Grid-invariant weight/bias blocks: no pointless double buffering.
            const_spec = lambda shape, imap: pl.BlockSpec(
                shape, imap, pipeline_mode=pl.Buffered(1))
        else:
            const_spec = pl.BlockSpec
        return pl.pallas_call(
            _linear_kernel,
            out_shape=jax.ShapeDtypeStruct((n_pad, c_out_pad), jnp.bfloat16),
            grid=(n_pad // node_tile,),
            in_specs=[
                pl.BlockSpec((node_tile, c_in_pad), lambda i: (i, 0)),
                const_spec((c_in_pad, c_out_pad), lambda i: (0, 0)),
                const_spec((1, c_out_pad), lambda i: (0, 0)),
            ],
            out_specs=pl.BlockSpec((node_tile, c_out_pad), lambda i: (i, 0)),
            compiler_params=pltpu.CompilerParams(
                dimension_semantics=("parallel",),
                vmem_limit_bytes=vmem_limit),
        )(x_p, w_t, b_p)

    try:
        lin = _run_linear(single_buffer=True)
    except Exception:
        # pipeline_mode / Buffered not supported on this jax version.
        lin = _run_linear(single_buffer=False)

    # ---- kernel 2: data-dependent row gather (scalar-prefetched src ids) ----
    # (n_pad, 1, c_out_pad) keeps the last-two block dims (1, c_out_pad) fully
    # tiling-conformant while the gather index lives on the free leading dim.
    lin3 = lin.reshape(n_pad, 1, c_out_pad)

    def _row_map(k):
        def index_map(e, src_ref):
            return (src_ref[e * _GATHER_ROWS + k], 0, 0)
        return index_map

    gathered = pl.pallas_call(
        _gather_kernel,
        out_shape=jax.ShapeDtypeStruct((e_pad, c_out_pad), jnp.bfloat16),
        grid_spec=pltpu.PrefetchScalarGridSpec(
            num_scalar_prefetch=1,
            grid=(e_pad // _GATHER_ROWS,),
            in_specs=[pl.BlockSpec((1, 1, c_out_pad), _row_map(k))
                      for k in range(_GATHER_ROWS)],
            out_specs=pl.BlockSpec((_GATHER_ROWS, c_out_pad),
                                   lambda e, src_ref: (e, 0)),
        ),
        compiler_params=pltpu.CompilerParams(
            dimension_semantics=("arbitrary",),
            vmem_limit_bytes=vmem_limit),
    )(src_p, *([lin3] * _GATHER_ROWS))
    # TODO(synk): for very large E, a manual per-chunk multi-row DMA gather
    # (make_async_copy from an ANY-space lin) would amortize per-step overhead.

    # ---- kernel 3: blocked one-hot scatter-mean over dst tiles ----
    kernel = functools.partial(_scatter_mean_kernel, dst_tile=dst_tile,
                               normalize=normalize)
    out_p = pl.pallas_call(
        kernel,
        out_shape=jax.ShapeDtypeStruct((m_pad, c_out_pad), jnp.float32),
        grid=(m_pad // dst_tile, num_chunks),
        in_specs=[
            pl.BlockSpec((1, 1, edge_tile), lambda i, j: (j, 0, 0)),
            pl.BlockSpec((edge_tile, c_out_pad), lambda i, j: (j, 0)),
        ],
        out_specs=pl.BlockSpec((dst_tile, c_out_pad), lambda i, j: (i, 0)),
        scratch_shapes=[
            pltpu.VMEM((dst_tile, c_out_pad), jnp.float32),  # sum accumulator
            pltpu.VMEM((dst_tile, 1), jnp.float32),          # in-degree counts
        ],
        compiler_params=pltpu.CompilerParams(
            dimension_semantics=("parallel", "arbitrary"),
            vmem_limit_bytes=vmem_limit),
    )(dst3, gathered)

    return out_p[:dim_size, :c_out]


def _reference(x, edge_index, weight, bias, dim_size, normalize=False):
    # Match the kernels' bf16 rounding of x, W and lin (MXU accumulates in f32).
    xb = x.astype(jnp.bfloat16).astype(jnp.float32)
    wb = weight.astype(jnp.bfloat16).astype(jnp.float32)
    lin = (xb @ wb.T + bias[None, :]).astype(jnp.bfloat16).astype(jnp.float32)
    src, dst = edge_index[0], edge_index[1]
    src_feat = lin[src]
    summed = jax.ops.segment_sum(src_feat, dst, num_segments=dim_size)
    cnt = jax.ops.segment_sum(jnp.ones((src.shape[0],), jnp.float32), dst,
                              num_segments=dim_size)
    out = summed / jnp.maximum(cnt, 1.0)[:, None]
    if normalize:
        norm = jnp.sqrt(jnp.sum(out * out, axis=-1, keepdims=True))
        out = out / jnp.maximum(norm, 1e-12)
    return out


if __name__ == "__main__":
    key = jax.random.PRNGKey(0)
    k_x, k_w, k_b, k_src, k_dst = jax.random.split(key, 5)

    N, C_IN, C_OUT, E = 16, 32, 32, 64

    x = jax.random.normal(k_x, (N, C_IN), dtype=jnp.float32)

    # deterministic "nn.Linear"-style init: U(-1/sqrt(C_in), 1/sqrt(C_in))
    bound = 1.0 / (C_IN ** 0.5)
    weight = jax.random.uniform(k_w, (C_OUT, C_IN), jnp.float32, -bound, bound)
    bias = jax.random.uniform(k_b, (C_OUT,), jnp.float32, -bound, bound)

    src = jax.random.randint(k_src, (E,), 0, N, dtype=jnp.int32)
    dst = jax.random.randint(k_dst, (E,), 0, N, dtype=jnp.int32)
    edge_index = jnp.stack([src, dst], axis=0)

    # torch_scatter default output size: dst.max() + 1
    dim_size = int(jax.device_get(jnp.max(dst))) + 1

    out = sage_conv(x, edge_index, weight, bias, dim_size=dim_size,
                    normalize=False)
    out = jax.block_until_ready(out)

    ref = _reference(x, edge_index, weight, bias, dim_size, normalize=False)
    assert out.shape == (dim_size, C_OUT)
    # bf16 lin + EUP approx reciprocal in the mean epilogue -> ~1e-3-level noise.
    assert jnp.allclose(out, ref, rtol=2e-3, atol=2e-3), (
        "mismatch vs reference: max abs err "
        f"{float(jnp.max(jnp.abs(out - ref)))}")

    print("KERNEL_OK")
</pallas_src>

<mosaic_0001>
module attributes {stable_mosaic.version = 11 : i64} {
  func.func @_linear_kernel(%arg0: i32, %arg1: memref<16x128xbf16, #tpu.memory_space<vmem>>, %arg2: memref<128x128xbf16, #tpu.memory_space<vmem>>, %arg3: memref<1x128xf32, #tpu.memory_space<vmem>>, %arg4: memref<16x128xbf16, #tpu.memory_space<vmem>>) attributes {dimension_semantics = [#tpu.dimension_semantics<parallel>], iteration_bounds = array<i64: 1>, scalar_prefetch = 0 : i64, scratch_operands = 0 : i64, tpu.core_type = #tpu.core_type<tc>, window_params = [{transform_indices = @transform_0, window_bounds = array<i64: 16, 128>}, {pipeline_mode = #tpu.pipeline_mode<synchronous>, transform_indices = @transform_1, window_bounds = array<i64: 128, 128>}, {pipeline_mode = #tpu.pipeline_mode<synchronous>, transform_indices = @transform_2, window_bounds = array<i64: 1, 128>}, {transform_indices = @transform_3, window_bounds = array<i64: 16, 128>}]} {
    %c0 = arith.constant 0 : index
    %c0_0 = arith.constant 0 : index
    %0 = vector.load %arg1[%c0, %c0_0] : memref<16x128xbf16, #tpu.memory_space<vmem>>, vector<16x128xbf16>
    %c0_1 = arith.constant 0 : index
    %c0_2 = arith.constant 0 : index
    %1 = vector.load %arg2[%c0_1, %c0_2] : memref<128x128xbf16, #tpu.memory_space<vmem>>, vector<128x128xbf16>
    %cst = arith.constant dense<0.000000e+00> : vector<16x128xf32>
    %2 = tpu.matmul %0, %1, %cst {dimension_numbers = #tpu.dot_dimension_numbers<[1], [0], [0], [1], [0, 0, 1, 1], [], []>} : vector<16x128xbf16>, vector<128x128xbf16>, vector<16x128xf32> -> vector<16x128xf32>
    %c0_3 = arith.constant 0 : index
    %c0_4 = arith.constant 0 : index
    %3 = vector.load %arg3[%c0_3, %c0_4] : memref<1x128xf32, #tpu.memory_space<vmem>>, vector<1x128xf32>
    %4 = vector.broadcast %3 : vector<1x128xf32> to vector<16x128xf32>
    %5 = arith.addf %2, %4 : vector<16x128xf32>
    %6 = arith.truncf %5 : vector<16x128xf32> to vector<16x128xbf16>
    %c0_5 = arith.constant 0 : index
    %c0_6 = arith.constant 0 : index
    %7 = vector.load %arg4[%c0_5, %c0_6] : memref<16x128xbf16, #tpu.memory_space<vmem>>, vector<16x128xbf16>
    tpu.vector_store %arg4[%c0_5, %c0_6], %6 {strides = array<i32>} : memref<16x128xbf16, #tpu.memory_space<vmem>>, vector<16x128xbf16>,
    return
  }
  func.func @transform_0(%arg0: i32) -> (i32, i32) {
    %c0_i32 = arith.constant 0 : i32
    %c0_i32_0 = arith.constant 0 : i32
    return %arg0, %c0_i32 : i32, i32
  }
  func.func @transform_1(%arg0: i32) -> (i32, i32) {
    %c0_i32 = arith.constant 0 : i32
    %c0_i32_0 = arith.constant 0 : i32
    %c0_i32_1 = arith.constant 0 : i32
    return %c0_i32, %c0_i32_0 : i32, i32
  }
  func.func @transform_2(%arg0: i32) -> (i32, i32) {
    %c0_i32 = arith.constant 0 : i32
    %c0_i32_0 = arith.constant 0 : i32
    %c0_i32_1 = arith.constant 0 : i32
    return %c0_i32, %c0_i32_0 : i32, i32
  }
  func.func @transform_3(%arg0: i32) -> (i32, i32) {
    %c0_i32 = arith.constant 0 : i32
    %c0_i32_0 = arith.constant 0 : i32
    return %arg0, %c0_i32 : i32, i32
  }
}

module attributes {stable_mosaic.version = 11 : i64} {
  func.func @_linear_kernel(%arg0: i32, %arg1: memref<16x128xbf16, #tpu.memory_space<vmem>>, %arg2: memref<128x128xbf16, #tpu.memory_space<vmem>>, %arg3: memref<1x128xf32, #tpu.memory_space<vmem>>, %arg4: memref<16x128xbf16, #tpu.memory_space<vmem>>) attributes {dimension_semantics = [#tpu.dimension_semantics<parallel>], iteration_bounds = array<i64: 1>, scalar_prefetch = 0 : i64, scratch_operands = 0 : i64, tpu.core_type = #tpu.core_type<tc>, window_params = [{transform_indices = @transform_0, window_bounds = array<i64: 16, 128>}, {pipeline_mode = #tpu.pipeline_mode<synchronous>, transform_indices = @transform_1, window_bounds = array<i64: 128, 128>}, {pipeline_mode = #tpu.pipeline_mode<synchronous>, transform_indices = @transform_2, window_bounds = array<i64: 1, 128>}, {transform_indices = @transform_3, window_bounds = array<i64: 16, 128>}]} {
    %c0 = arith.constant 0 : index
    %c0_0 = arith.constant 0 : index
    %0 = vector.load %arg1[%c0, %c0_0] : memref<16x128xbf16, #tpu.memory_space<vmem>>, vector<16x128xbf16>
    %c0_1 = arith.constant 0 : index
    %c0_2 = arith.constant 0 : index
    %1 = vector.load %arg2[%c0_1, %c0_2] : memref<128x128xbf16, #tpu.memory_space<vmem>>, vector<128x128xbf16>
    %cst = arith.constant dense<0.000000e+00> : vector<16x128xf32>
    %2 = tpu.matmul %0, %1, %cst {dimension_numbers = #tpu.dot_dimension_numbers<[1], [0], [0], [1], [0, 0, 1, 1], [], []>} : vector<16x128xbf16>, vector<128x128xbf16>, vector<16x128xf32> -> vector<16x128xf32>
    %c0_3 = arith.constant 0 : index
    %c0_4 = arith.constant 0 : index
    %3 = vector.load %arg3[%c0_3, %c0_4] : memref<1x128xf32, #tpu.memory_space<vmem>>, vector<1x128xf32>
    %4 = vector.broadcast %3 : vector<1x128xf32> to vector<16x128xf32>
    %5 = arith.addf %2, %4 : vector<16x128xf32>
    %6 = arith.truncf %5 : vector<16x128xf32> to vector<16x128xbf16>
    %c0_5 = arith.constant 0 : index
    %c0_6 = arith.constant 0 : index
    %7 = vector.load %arg4[%c0_5, %c0_6] : memref<16x128xbf16, #tpu.memory_space<vmem>>, vector<16x128xbf16>
    tpu.vector_store %arg4[%c0_5, %c0_6], %6 {strides = array<i32>} : memref<16x128xbf16, #tpu.memory_space<vmem>>, vector<16x128xbf16>,
    return
  }
  func.func @transform_0(%arg0: i32) -> (i32, i32) {
    %c0_i32 = arith.constant 0 : i32
    %c0_i32_0 = arith.constant 0 : i32
    return %arg0, %c0_i32 : i32, i32
  }
  func.func @transform_1(%arg0: i32) -> (i32, i32) {
    %c0_i32 = arith.constant 0 : i32
    %c0_i32_0 = arith.constant 0 : i32
    %c0_i32_1 = arith.constant 0 : i32
    return %c0_i32, %c0_i32_0 : i32, i32
  }
  func.func @transform_2(%arg0: i32) -> (i32, i32) {
    %c0_i32 = arith.constant 0 : i32
    %c0_i32_0 = arith.constant 0 : i32
    %c0_i32_1 = arith.constant 0 : i32
    return %c0_i32, %c0_i32_0 : i32, i32
  }
  func.func @transform_3(%arg0: i32) -> (i32, i32) {
    %c0_i32 = arith.constant 0 : i32
    %c0_i32_0 = arith.constant 0 : i32
    return %arg0, %c0_i32 : i32, i32
  }
}

</mosaic_0001>

<bundles_post_ra>
// kernel: tpu_custom_call.1
= control target key start
LH: loop header
LB: loop body
LE: loop exit
PB: predicated region body
PF: predicated region fallthrough
CT: control target
= control target key end

     0   :  { %8 = vsyncpa [#allocation3], 0  ;;  %s341_s0 = inlined_call_operand.hbm [shape: bf16[16,128], index: 0, kind: input, shape index: {}]   ;;  %s342_s1 = inlined_call_operand.hbm [shape: bf16[128,128], index: 1, kind: input, shape index: {}]   ;;  %s343_s2 = inlined_call_operand.vmem [shape: f32[1,128], index: 2, kind: input, shape index: {}]   ;;  %s344_s3 = inlined_call_operand.hbm [shape: bf16[16,128], index: 3, kind: output, shape index: {}]  }
   0x1   :  { %9 = vsyncpa [#allocation6], 0 }
   0x2   :  { %10 = vsyncpa [#allocation4], 0  ;;  %s15_s14 = sshll.u32 %s341_s0, 4  ;;  %s295_s15 = smov [#allocation2]   ;;  %s16_s14 = int_to_ptr.hbm [resolvable:$true] %s15_s14 }
   0x3   :  { %s17_s16 = sshll.u32 %s295_s15, 4  ;;  %s28_s19 = sshll.u32 %s342_s1, 4  ;;  %s18_s16 = int_to_ptr.vmem [resolvable:$true] %s17_s16  ;;  %s29_s19 = int_to_ptr.hbm [resolvable:$true] %s28_s19 }
   0x4   :  { %s296_s20 = smov 64   ;;  %s297_s21 = smov 4  }
   0x5   :  { %23 = dma.hbm_to_vmem [thread:$0]  %s16_s14, 128, %s18_s16, [#allocation3], %s296_s20, %s296_s20, %s297_s21  }
   0x6   :  { %s298_s22 = smov [#allocation5]  }
   0x7   :  { %s30_s23 = sshll.u32 %s298_s22, 4  ;;  %s31_s23 = int_to_ptr.vmem [resolvable:$true] %s30_s23 }
   0x8   :  { %36 = dma.hbm_to_vmem [thread:$0]  %s29_s19, 1024, %s31_s23, [#allocation6], %s296_s20, %s296_s20, %s297_s21  }
   0x9   :  { %289 = dma.done.wait [#allocation3], 128  }
   0xa   :  { %290 = vsyncadd [#allocation3], 4294967168 }
   0xb   :  { %291 = dma.done.wait [#allocation6], 1024  }
   0xc   :  { %292 = vsyncadd [#allocation6], 4294966272  ;;  %v205_v0 = vld [vmem:[#allocation5 + $0x38] sm:$0xff]  ;;  %v204_v1 = vld [vmem:[#allocation5 + $0x30] sm:$0xff]  ;;  %s299_s24 = smov [#allocation7]   ;;  %s147_s28 = sshll.u32 %s344_s3, 4  ;;  %s148_s28 = int_to_ptr.hbm [resolvable:$true] %s147_s28 }
   0xd   :  { %123 = vmatpush.bf16.msra.mxu0 %v205_v0  ;;  %v203_v2 = vld [vmem:[#allocation5 + $0x28] sm:$0xff]  ;;  %v202_v3 = vld [vmem:[#allocation5 + $0x20] sm:$0xff]  ;;  %v201_v4 = vld [vmem:[#allocation5 + $0x18] sm:$0xff]  ;;  %s145_s25 = sshll.u32 %s299_s24, 4  ;;  %s146_s25 = int_to_ptr.vmem [resolvable:$true] %s145_s25 }
   0xe   :  { %v200_v5 = vld [vmem:[#allocation5 + $0x10] sm:$0xff]  ;;  %v199_v6 = vld [vmem:[#allocation5 + $0x8] sm:$0xff]  ;;  %v198_v7 = vld [vmem:[#allocation5] sm:$0xff] }
   0xf   :  { %v197_v8 = vld [vmem:[#allocation2] sm:$0xff] }
  0x10   :  { %v216_v10 = vld [vmem:[%s343_s2] ss:$0 sm:$0xff] }
  0x11   :  { %124 = vmatpush.bf16.msra.mxu0 %v204_v1 }
  0x15   :  { %125 = vmatpush.bf16.msra.mxu0 %v203_v2 }
  0x19   :  { %126 = vmatpush.bf16.msra.mxu0 %v202_v3 }
  0x1d   :  { %127 = vmatpush.bf16.msra.mxu0 %v201_v4 }
  0x21   :  { %128 = vmatpush.bf16.msra.mxu0 %v200_v5 }
  0x25   :  { %129 = vmatpush.bf16.msra.mxu0 %v199_v6 }
  0x29   :  { %130 = vmatpush.bf16.msra.mxu0 %v198_v7 }
  0x2c   :  { %131 = vmatmul.bf16.vlgmr.msra.gmra.mxu0 %v197_v8 }
  0xa9   :  { %v132_v9 = vpop.f32.mrf.mxu0 }
  0xaa   :  { %v133_v12 = vadd.f32 %v216_v10, %v132_v9 }
  0xb1   :  { %v134_v11 = vpop.f32.mrf.mxu0 }
  0xb2   :  { %v135_v13 = vadd.f32 %v216_v10, %v134_v11 }
  0xb4   :  { %v209_v14 = vpack.c.bf16 %v135_v13, %v133_v12 }
  0xb6   :  { %210 = vst [vmem:[#allocation7] sm:$0xff] %v209_v14  }
  0xb7   :  { %153 = dma.vmem_to_hbm [thread:$0]  %s146_s25, 128, %s148_s28, [#allocation4], %s296_s20, %s296_s20, %s297_s21  }
  0xb8   :  { %293 = dma.done.wait [#allocation4], 128  }
  0xb9   :  { %294 = vsyncadd [#allocation4], 4294967168 }
  0xba   :  { %158 = vsyncpa [#allocation3], 1 }
  0xbb   :  { %159 = vsyncpa [#allocation6], 1 }
  0xbc   :  { %160 = vsyncpa [#allocation4], 1 }

// kernel: tpu_custom_call.1
= control target key start
LH: loop header
LB: loop body
LE: loop exit
PB: predicated region body
PF: predicated region fallthrough
CT: control target
= control target key end

     0   :  { %8 = vsyncpa [#allocation3], 0  ;;  %s341_s0 = inlined_call_operand.hbm [shape: bf16[16,128], index: 0, kind: input, shape index: {}]   ;;  %s342_s1 = inlined_call_operand.hbm [shape: bf16[128,128], index: 1, kind: input, shape index: {}]   ;;  %s343_s2 = inlined_call_operand.vmem [shape: f32[1,128], index: 2, kind: input, shape index: {}]   ;;  %s344_s3 = inlined_call_operand.hbm [shape: bf16[16,128], index: 3, kind: output, shape index: {}]  }
   0x1   :  { %9 = vsyncpa [#allocation6], 0 }
   0x2   :  { %10 = vsyncpa [#allocation4], 0  ;;  %s15_s14 = sshll.u32 %s341_s0, 4  ;;  %s295_s15 = smov [#allocation2]   ;;  %s16_s14 = int_to_ptr.hbm [resolvable:$true] %s15_s14 }
   0x3   :  { %s17_s16 = sshll.u32 %s295_s15, 4  ;;  %s28_s19 = sshll.u32 %s342_s1, 4  ;;  %s18_s16 = int_to_ptr.vmem [resolvable:$true] %s17_s16  ;;  %s29_s19 = int_to_ptr.hbm [resolvable:$true] %s28_s19 }
   0x4   :  { %s296_s20 = smov 64   ;;  %s297_s21 = smov 4  }
   0x5   :  { %23 = dma.hbm_to_vmem [thread:$0]  %s16_s14, 128, %s18_s16, [#allocation3], %s296_s20, %s296_s20, %s297_s21  }
   0x6   :  { %s298_s22 = smov [#allocation5]  }
   0x7   :  { %s30_s23 = sshll.u32 %s298_s22, 4  ;;  %s31_s23 = int_to_ptr.vmem [resolvable:$true] %s30_s23 }
   0x8   :  { %36 = dma.hbm_to_vmem [thread:$0]  %s29_s19, 1024, %s31_s23, [#allocation6], %s296_s20, %s296_s20, %s297_s21  }
   0x9   :  { %289 = dma.done.wait [#allocation3], 128  }
   0xa   :  { %290 = vsyncadd [#allocation3], 4294967168 }
   0xb   :  { %291 = dma.done.wait [#allocation6], 1024  }
   0xc   :  { %292 = vsyncadd [#allocation6], 4294966272  ;;  %v205_v0 = vld [vmem:[#allocation5 + $0x38] sm:$0xff]  ;;  %v204_v1 = vld [vmem:[#allocation5 + $0x30] sm:$0xff]  ;;  %s299_s24 = smov [#allocation7]   ;;  %s147_s28 = sshll.u32 %s344_s3, 4  ;;  %s148_s28 = int_to_ptr.hbm [resolvable:$true] %s147_s28 }
   0xd   :  { %123 = vmatpush.bf16.msra.mxu0 %v205_v0  ;;  %v203_v2 = vld [vmem:[#allocation5 + $0x28] sm:$0xff]  ;;  %v202_v3 = vld [vmem:[#allocation5 + $0x20] sm:$0xff]  ;;  %v201_v4 = vld [vmem:[#allocation5 + $0x18] sm:$0xff]  ;;  %s145_s25 = sshll.u32 %s299_s24, 4  ;;  %s146_s25 = int_to_ptr.vmem [resolvable:$true] %s145_s25 }
   0xe   :  { %v200_v5 = vld [vmem:[#allocation5 + $0x10] sm:$0xff]  ;;  %v199_v6 = vld [vmem:[#allocation5 + $0x8] sm:$0xff]  ;;  %v198_v7 = vld [vmem:[#allocation5] sm:$0xff] }
   0xf   :  { %v197_v8 = vld [vmem:[#allocation2] sm:$0xff] }
  0x10   :  { %v216_v10 = vld [vmem:[%s343_s2] ss:$0 sm:$0xff] }
  0x11   :  { %124 = vmatpush.bf16.msra.mxu0 %v204_v1 }
  0x15   :  { %125 = vmatpush.bf16.msra.mxu0 %v203_v2 }
  0x19   :  { %126 = vmatpush.bf16.msra.mxu0 %v202_v3 }
  0x1d   :  { %127 = vmatpush.bf16.msra.mxu0 %v201_v4 }
  0x21   :  { %128 = vmatpush.bf16.msra.mxu0 %v200_v5 }
  0x25   :  { %129 = vmatpush.bf16.msra.mxu0 %v199_v6 }
  0x29   :  { %130 = vmatpush.bf16.msra.mxu0 %v198_v7 }
  0x2c   :  { %131 = vmatmul.bf16.vlgmr.msra.gmra.mxu0 %v197_v8 }
  0xa9   :  { %v132_v9 = vpop.f32.mrf.mxu0 }
  0xaa   :  { %v133_v12 = vadd.f32 %v216_v10, %v132_v9 }
  0xb1   :  { %v134_v11 = vpop.f32.mrf.mxu0 }
  0xb2   :  { %v135_v13 = vadd.f32 %v216_v10, %v134_v11 }
  0xb4   :  { %v209_v14 = vpack.c.bf16 %v135_v13, %v133_v12 }
  0xb6   :  { %210 = vst [vmem:[#allocation7] sm:$0xff] %v209_v14  }
  0xb7   :  { %153 = dma.vmem_to_hbm [thread:$0]  %s146_s25, 128, %s148_s28, [#allocation4], %s296_s20, %s296_s20, %s297_s21  }
  0xb8   :  { %293 = dma.done.wait [#allocation4], 128  }
  0xb9   :  { %294 = vsyncadd [#allocation4], 4294967168 }
  0xba   :  { %158 = vsyncpa [#allocation3], 1 }
  0xbb   :  { %159 = vsyncpa [#allocation6], 1 }
  0xbc   :  { %160 = vsyncpa [#allocation4], 1 }

</bundles_post_ra>
